<compile_context>
chip_gen: v5e
topology: v5e:2x2
jax: 0.10.0
libtpu: 0.0.40
codegen_flags: <defaults>
</compile_context>

<pallas_src>
import math
import jax
import jax.numpy as jnp
from jax.experimental import pallas as pl
from jax.experimental.pallas import tpu as pltpu  # noqa: F401  (kept for TPU backend parity)

BATCH = 2
LENGTH = 16      # sequence length
D_MODEL = 32     # config.d_model


def pos_encoder_kernel(x_ref, pe_ref, o_ref):
    # Single dense slab add: one vld per operand, one vadd, one unmasked vst.
    o_ref[...] = x_ref[...] + pe_ref[...]


def make_pos_encoding_ld(length, d_model):
    """PE table directly in (L, D) layout: pe_ld[p, i] = sin(p * freqs[i] + phases[i]).

    This equals the transpose of the PyTorch (d_model, length) nn.Parameter, so
    out[b, l, d] = x[b, l, d] + pe_ld[l, d] matches the module's forward exactly,
    and no runtime transpose is needed before the kernel.
    """
    idx = jnp.arange(d_model)
    i_f = idx.astype(jnp.float32)
    even = (idx % 2 == 0)
    freqs = jnp.where(even,
                      10000.0 ** (-i_f / d_model),
                      -(10000.0 ** ((1.0 - i_f) / d_model)))
    phases = jnp.where(even, 0.0, math.pi / 2)
    pos = jnp.arange(length, dtype=jnp.float32)
    return jnp.sin(pos[:, None] * freqs[None, :] + phases[None, :])   # (length, d_model)


def pos_encoder(x, pe_ld):
    """Forward of PosEncoder: out[b, l, d] = x[b, l, d] + pe_ld[l, d]."""
    B, L, D = x.shape
    n = B * L * D

    if n % (8 * 128) == 0:
        # Fully dense repack: (rows, 128) with rows a multiple of 8 -> whole vregs.
        rows = n // 128
        x_slab = x.reshape(rows, 128)                                  # zero-cost bitcast reshape
        pe_slab = jnp.broadcast_to(pe_ld[None], (B, L, D)).reshape(rows, 128)  # constant under jit
    else:
        # Fallback: keep lane axis = L*D (single block; partial tiles if not /128).
        assert (L * D) % 128 == 0 or True  # layout still correct, just masked stores
        x_slab = x.reshape(B, L * D)
        pe_slab = jnp.broadcast_to(pe_ld.reshape(1, L * D), (B, L * D))

    slab_shape = x_slab.shape
    out = pl.pallas_call(
        pos_encoder_kernel,
        out_shape=jax.ShapeDtypeStruct(slab_shape, x.dtype),
        in_specs=[pl.BlockSpec(slab_shape, lambda: (0, 0)),
                  pl.BlockSpec(slab_shape, lambda: (0, 0))],
        out_specs=pl.BlockSpec(slab_shape, lambda: (0, 0)),
        input_output_aliases={0: 0},   # x slab is dead after this op; reuse its buffer
    )(x_slab, pe_slab)
    return out.reshape(B, L, D)


if __name__ == "__main__":
    key = jax.random.PRNGKey(0)
    x = jax.random.normal(key, (BATCH, LENGTH, D_MODEL), jnp.float32)

    pe_ld = make_pos_encoding_ld(LENGTH, D_MODEL)     # (L, D) == PyTorch pe.T

    # jit so the PE broadcast/reshape constant-folds and x's reshape fuses away.
    fwd = jax.jit(lambda xx: pos_encoder(xx, pe_ld))
    y = jax.block_until_ready(fwd(x))

    # Pure-JAX reference of the PyTorch forward, using the (d_model, length) table:
    pe_dl = jnp.transpose(pe_ld)                                        # (D, L), like nn.Parameter
    ref = jnp.transpose(jnp.transpose(x, (0, 2, 1)) + pe_dl[None, :, :], (0, 2, 1))

    assert y.shape == (BATCH, LENGTH, D_MODEL)
    assert bool(jnp.all(jnp.isfinite(y)))
    assert bool(jnp.allclose(y, ref, atol=1e-6, rtol=1e-6))
    print("KERNEL_OK")
</pallas_src>

<mosaic_0001>
module attributes {stable_mosaic.version = 11 : i64} {
  func.func @pos_encoder_kernel(%arg0: memref<8x128xf32, #tpu.memory_space<vmem>>, %arg1: memref<8x128xf32, #tpu.memory_space<vmem>>, %arg2: memref<8x128xf32, #tpu.memory_space<vmem>>) attributes {dimension_semantics = [], scalar_prefetch = 0 : i64, scratch_operands = 0 : i64, tpu.core_type = #tpu.core_type<tc>} {
    %c0 = arith.constant 0 : index
    %c0_0 = arith.constant 0 : index
    %0 = vector.load %arg0[%c0, %c0_0] : memref<8x128xf32, #tpu.memory_space<vmem>>, vector<8x128xf32>
    %c0_1 = arith.constant 0 : index
    %c0_2 = arith.constant 0 : index
    %1 = vector.load %arg1[%c0_1, %c0_2] : memref<8x128xf32, #tpu.memory_space<vmem>>, vector<8x128xf32>
    %2 = arith.addf %0, %1 : vector<8x128xf32>
    %c0_3 = arith.constant 0 : index
    %c0_4 = arith.constant 0 : index
    %3 = vector.load %arg2[%c0_3, %c0_4] : memref<8x128xf32, #tpu.memory_space<vmem>>, vector<8x128xf32>
    tpu.vector_store %arg2[%c0_3, %c0_4], %2 {strides = array<i32>} : memref<8x128xf32, #tpu.memory_space<vmem>>, vector<8x128xf32>,
    return
  }
}

</mosaic_0001>

<bundles_post_ra>
// kernel: _lambda_.1
= control target key start
LH: loop header
LB: loop body
LE: loop exit
PB: predicated region body
PF: predicated region fallthrough
CT: control target
= control target key end

     0   :  { %s43_s0 = inlined_call_operand.vmem [shape: f32[8,128], index: 0, kind: input, shape index: {}, may-alias: {0,2}]   ;;  %s44_s1 = inlined_call_operand.vmem [shape: f32[8,128], index: 1, kind: input, shape index: {}]   ;;  %s45_s2 = inlined_call_operand.vmem [shape: f32[8,128], index: 2, kind: output, shape index: {}, may-alias: {0,2}]  }
   0x1   :  { %v11_v0 = vld [vmem:[%s43_s0] sm:$0xff] }
   0x2   :  { %v12_v1 = vld [vmem:[%s44_s1] sm:$0xff] }
   0x3   :  { %v13_v2 = vadd.f32 %v12_v1, %v11_v0 }
   0x5   :  { %14 = vst [vmem:[%s45_s2] sm:$0xff] %v13_v2 }

</bundles_post_ra>
